<compile_context>
chip_gen: v6e
topology: v6e:2x2x1
jax: 0.10.0
libtpu: 0.0.40
codegen_flags: <defaults>
</compile_context>

<pallas_src>
import functools

import jax
import jax.numpy as jnp
import numpy as np
from jax.experimental import pallas as pl
from jax.experimental.pallas import tpu as pltpu


def _round_up(n, m):
    return ((n + m - 1) // m) * m


@functools.lru_cache(maxsize=1)
def _vmem_capacity_bytes():
    """Physical VMEM per core (trace-time query); conservative fallback = 64 MiB (v7x)."""
    try:
        info = pltpu.get_tpu_info()
        for attr in ("vmem_capacity_bytes", "vmem_bytes", "vmem_capacity"):
            v = getattr(info, attr, None)
            if v:
                return int(v)
    except Exception:
        pass
    return 64 * 1024 * 1024


def _i_chunk_divisors(i_pad):
    divs = [d for d in range(128, i_pad + 1, 128) if i_pad % d == 0]
    return sorted(divs, reverse=True) if divs else [i_pad]


def _select_tiles(T, H, I_pad, itemsize, vmem_limit):
    """Pick (tT, T_pad, tI) so everything resident in VMEM fits `vmem_limit`."""
    headroom = 6 * 1024 * 1024  # rw blocks, semaphores, compiler-internal scratch

    def nonweight(tT):
        return (2 * tT * H * itemsize      # x block, double-buffered
                + 2 * tT * H * itemsize    # output block, double-buffered
                + tT * H * 4)              # f32 accumulator scratch

    def wbytes(tI):
        return 2 * 3 * H * tI * itemsize   # gate/up/down blocks, double-buffered

    min_w = wbytes(min(128, I_pad))

    if T <= 256:
        # Decode / small batch: one token tile, padded to full bf16 sublane packing.
        tT = _round_up(T, 16)
    else:
        # Prefill: weight HBM traffic scales as T/tT -> take the biggest tile that fits
        # the budget without excessive token padding.
        tT = 128
        base_pad = _round_up(T, 128)
        for cand in (512, 256):
            extra = _round_up(T, cand) - base_pad
            if extra * 8 <= T and nonweight(cand) + min_w + headroom <= vmem_limit:
                tT = cand
                break
    T_pad = _round_up(T, tT)

    tI = None
    for cand in _i_chunk_divisors(I_pad):
        if nonweight(tT) + wbytes(cand) + headroom <= vmem_limit:
            tI = cand
            break
    if tI is None:
        tI = _i_chunk_divisors(I_pad)[-1]  # best effort (tiny / exotic shapes)
    return tT, T_pad, tI


# ----------------------------- fused MoE kernel -----------------------------
#
# grid = (n_split, T_tiles, G_per_split, I_chunks)
#   n_split   : expert-axis split for decode (2 TCs on v7x) -> "parallel"
#   T_tiles   : token tiles                                 -> "parallel"
#   G_per_split, I_chunks : reductions into the accumulator -> "arbitrary"

def _moe_kernel(active_ref,                                  # scalar prefetch (SMEM)
                x_ref, wg_ref, wu_ref, wd_ref, rw_ref,       # inputs
                o_ref,                                       # output (partial per split)
                acc_ref):                                    # VMEM scratch (f32)
    g = pl.program_id(2)
    c = pl.program_id(3)
    first = jnp.logical_and(g == 0, c == 0)
    last = jnp.logical_and(g == pl.num_programs(2) - 1,
                           c == pl.num_programs(3) - 1)

    @pl.when(first)
    def _():
        acc_ref[...] = jnp.zeros_like(acc_ref)

    x = x_ref[...]                                                      # (tT, H)

    # One expert, one I-chunk: (silu(x Wg_c) * (x Wu_c)) @ Wd_c accumulates exactly to the
    # full expert output because SiLU-gating is elementwise over the intermediate dim.
    gg = jnp.dot(x, wg_ref[0], preferred_element_type=jnp.float32)      # (tT, tI)
    uu = jnp.dot(x, wu_ref[0], preferred_element_type=jnp.float32)      # (tT, tI)
    h = (gg * jax.nn.sigmoid(gg)) * uu                                  # SiLU(g)*u
    h = h * rw_ref[0]                                                   # fold routing weight
    acc_ref[...] += jnp.dot(h.astype(x.dtype), wd_ref[0],
                            preferred_element_type=jnp.float32)         # (tT, H)

    @pl.when(last)
    def _():
        o_ref[0] = acc_ref[...].astype(o_ref.dtype)


# ------------------------------ JAX wrapper ---------------------------------


def prepare_params(gate_w, wg, wu, wd, swg, swu, swd, dtype=None):
    """One-time weight re-layout (call OUTSIDE the jitted forward).

    Torch layouts in:  gate_w (E,H), wg/wu (E,I,H), wd (E,H,I), swg/swu (SI,H), swd (H,SI).
    Kernel layouts out: wg/wu (E_tot, H, I_pad), wd (E_tot, I_pad, H) where the expert
    intermediate dim is zero-padded to a friendly multiple and the shared-experts MLP is
    appended as `n_pseudo = ceil(SI / I_pad)` pseudo-experts (routing weight 1)."""
    if dtype is None:
        dtype = wg.dtype
    E, I, H = wg.shape
    SI = swg.shape[0]

    # Pad I so the in-kernel chunk size is not forced onto tiny divisors; zero-padded
    # gate/up columns give silu(0)*0 = 0, and padded down rows are zero -> exact.
    I_pad = _round_up(I, 256) if I > 128 else _round_up(I, 128)

    wg_t = jnp.pad(jnp.transpose(wg, (0, 2, 1)).astype(dtype),
                   ((0, 0), (0, 0), (0, I_pad - I)))                 # (E, H, I_pad)
    wu_t = jnp.pad(jnp.transpose(wu, (0, 2, 1)).astype(dtype),
                   ((0, 0), (0, 0), (0, I_pad - I)))
    wd_t = jnp.pad(jnp.transpose(wd, (0, 2, 1)).astype(dtype),
                   ((0, 0), (0, I_pad - I), (0, 0)))                 # (E, I_pad, H)

    # Shared experts -> pseudo-experts (chunks of SI, each I_pad wide).
    n_pseudo = -(-SI // I_pad)
    SI_pad = n_pseudo * I_pad
    swg_t = jnp.pad(jnp.transpose(swg, (1, 0)).astype(dtype), ((0, 0), (0, SI_pad - SI)))
    swu_t = jnp.pad(jnp.transpose(swu, (1, 0)).astype(dtype), ((0, 0), (0, SI_pad - SI)))
    swd_t = jnp.pad(jnp.transpose(swd, (1, 0)).astype(dtype), ((0, SI_pad - SI), (0, 0)))
    swg_c = jnp.transpose(swg_t.reshape(H, n_pseudo, I_pad), (1, 0, 2))  # (n_pseudo, H, I_pad)
    swu_c = jnp.transpose(swu_t.reshape(H, n_pseudo, I_pad), (1, 0, 2))
    swd_c = swd_t.reshape(n_pseudo, I_pad, H)                            # (n_pseudo, I_pad, H)

    return dict(
        gate_w=jnp.asarray(gate_w, jnp.float32),                         # router stays f32
        wg=jnp.concatenate([wg_t, swg_c], axis=0),
        wu=jnp.concatenate([wu_t, swu_c], axis=0),
        wd=jnp.concatenate([wd_t, swd_c], axis=0),
    )


@functools.partial(jax.jit, static_argnames=("top_k",))
def moe_forward(x, params, *, top_k):
    """x: (..., H). params: output of prepare_params. Returns same shape as x."""
    orig_shape = x.shape
    H = x.shape[-1]
    dtype = params["wg"].dtype
    itemsize = jnp.dtype(dtype).itemsize

    E = params["gate_w"].shape[0]                 # routed experts
    E_tot, _, I_pad = params["wg"].shape          # routed + shared pseudo-experts
    n_pseudo = E_tot - E

    xf_in = x.reshape(-1, H)
    T = xf_in.shape[0]
    xf = xf_in.astype(dtype)

    # ---- router (fp32, tiny; let XLA fuse matmul + softmax + top-k) ----
    logits = jnp.einsum("th,eh->te", xf_in.astype(jnp.float32), params["gate_w"],
                        preferred_element_type=jnp.float32)                 # (T, E)
    scores = jax.nn.softmax(logits, axis=-1)
    k = min(top_k, E)
    topk_w, topk_idx = jax.lax.top_k(scores, k)
    topk_w = (topk_w / jnp.sum(topk_w, axis=-1, keepdims=True)).astype(jnp.float32)

    # ---- generation-aware tile selection ----
    vmem_limit = min(int(_vmem_capacity_bytes() * 0.75), 112 * 1024 * 1024)
    tT, T_pad, tI = _select_tiles(T, H, I_pad, itemsize, vmem_limit)
    n_t = T_pad // tT
    n_c = I_pad // tI
    xf_p = jnp.pad(xf, ((0, T_pad - T), (0, 0))) if T_pad != T else xf

    # ---- active-expert slot list: routed experts that received weight, then the
    #      always-on shared pseudo-experts ----
    G_routed = min(E, T * k)                      # static upper bound on #active routed
    counts = jnp.zeros((E,), jnp.int32).at[topk_idx.reshape(-1)].add(1)
    order = jnp.argsort((counts == 0).astype(jnp.int32))     # active ids first
    routed_ids = order[:G_routed].astype(jnp.int32)
    active = jnp.concatenate([routed_ids, jnp.arange(E, E_tot, dtype=jnp.int32)])
    G_total = G_routed + n_pseudo

    # ---- slot-major routing weights (G_total, T_pad); pseudo-experts get weight 1.0;
    #      inactive padding slots / padded tokens are all-zero -> contribute nothing ----
    rw_dense = jnp.zeros((E, T_pad), jnp.float32)
    rw_dense = rw_dense.at[topk_idx, jnp.arange(T)[:, None]].add(topk_w)
    rw = jnp.concatenate([rw_dense[routed_ids],
                          jnp.ones((n_pseudo, T_pad), jnp.float32)], axis=0)

    # ---- decode on a 2-TC chip: token axis degenerate (n_t == 1) -> split experts
    #      across a leading parallel axis; negligible cost on single-TC chips ----
    n_split = 2 if (n_t == 1 and G_total >= 4) else 1
    if G_total % n_split:
        active = jnp.concatenate([active, jnp.zeros((1,), jnp.int32)])      # zero-weight pad
        rw = jnp.concatenate([rw, jnp.zeros((1, T_pad), jnp.float32)], axis=0)
        G_total += 1
    G_ps = G_total // n_split
    rw = rw.reshape(G_total, T_pad, 1)

    def x_map(s, t, g, c, act):
        return (t, 0)

    def wgate_map(s, t, g, c, act):
        return (act[G_ps * s + g], 0, c)

    def wdown_map(s, t, g, c, act):
        return (act[G_ps * s + g], c, 0)

    def rw_map(s, t, g, c, act):
        return (G_ps * s + g, t, 0)

    def out_map(s, t, g, c, act):
        return (s, t, 0)

    grid_spec = pltpu.PrefetchScalarGridSpec(
        num_scalar_prefetch=1,
        grid=(n_split, n_t, G_ps, n_c),
        in_specs=[
            pl.BlockSpec((tT, H), x_map),                    # x
            pl.BlockSpec((1, H, tI), wgate_map),             # Wgate (routed + pseudo)
            pl.BlockSpec((1, H, tI), wgate_map),             # Wup
            pl.BlockSpec((1, tI, H), wdown_map),             # Wdown
            pl.BlockSpec((1, tT, 1), rw_map),                # routing weights (slot-major)
        ],
        out_specs=pl.BlockSpec((1, tT, H), out_map),
        scratch_shapes=[pltpu.VMEM((tT, H), jnp.float32)],
    )

    cost = pl.CostEstimate(
        flops=int(6 * T_pad * H * I_pad * G_total),
        transcendentals=int(T_pad * I_pad * G_total),
        bytes_accessed=int(itemsize * (n_t * G_total * 3 * H * I_pad
                                       + n_split * 2 * T_pad * H)
                           + 4 * G_total * T_pad),
    )

    y = pl.pallas_call(
        _moe_kernel,
        out_shape=jax.ShapeDtypeStruct((n_split, T_pad, H), dtype),
        grid_spec=grid_spec,
        compiler_params=pltpu.CompilerParams(
            dimension_semantics=("parallel", "parallel", "arbitrary", "arbitrary"),
            vmem_limit_bytes=vmem_limit,
        ),
        cost_estimate=cost,
    )(active, xf_p, params["wg"], params["wu"], params["wd"], rw)

    if n_split > 1:
        y = y.astype(jnp.float32).sum(axis=0).astype(dtype)
    else:
        y = y[0]
    return y[:T].reshape(orig_shape)


# ------------------------------ reference -----------------------------------


def ref_forward(x, gate_w, wg, wu, wd, swg, swu, swd, top_k):
    orig_shape = x.shape
    H = x.shape[-1]
    xf = x.reshape(-1, H)
    logits = xf @ gate_w.T
    scores = jax.nn.softmax(logits, axis=-1)
    tw, ti = jax.lax.top_k(scores, top_k)
    tw = tw / jnp.sum(tw, axis=-1, keepdims=True)

    def silu(v):
        return v * jax.nn.sigmoid(v)

    y = jnp.zeros_like(xf)
    for e in range(wg.shape[0]):
        out_e = (silu(xf @ wg[e].T) * (xf @ wu[e].T)) @ wd[e].T
        w_e = jnp.sum(jnp.where(ti == e, tw, 0.0), axis=-1)
        y = y + w_e[:, None] * out_e
    shared = (silu(xf @ swg.T) * (xf @ swu.T)) @ swd.T
    return (y + shared).reshape(orig_shape)


# --------------------------------- main --------------------------------------


if __name__ == "__main__":
    key = jax.random.PRNGKey(0)
    B, S, H = 2, 8, 32          # batch, seq, hidden
    E, K, I = 8, 2, 64          # routed experts, top_k, moe intermediate size
    N_SHARED = 2
    SI = N_SHARED * I           # shared-experts intermediate size

    ks = jax.random.split(key, 8)
    x = jax.random.normal(ks[0], (B, S, H), jnp.float32) * 0.5
    gate_w = jax.random.normal(ks[1], (E, H), jnp.float32) * 0.1      # torch [out, in]
    wg = jax.random.normal(ks[2], (E, I, H), jnp.float32) * 0.1
    wu = jax.random.normal(ks[3], (E, I, H), jnp.float32) * 0.1
    wd = jax.random.normal(ks[4], (E, H, I), jnp.float32) * 0.1
    swg = jax.random.normal(ks[5], (SI, H), jnp.float32) * 0.1
    swu = jax.random.normal(ks[6], (SI, H), jnp.float32) * 0.1
    swd = jax.random.normal(ks[7], (H, SI), jnp.float32) * 0.1

    # One-time weight re-layout + shared-expert folding (outside the jitted forward).
    params_f32 = prepare_params(gate_w, wg, wu, wd, swg, swu, swd, dtype=jnp.float32)

    y = moe_forward(x, params_f32, top_k=K)
    jax.block_until_ready(y)

    y_ref = ref_forward(x, gate_w, wg, wu, wd, swg, swu, swd, K)
    np.testing.assert_allclose(np.asarray(y), np.asarray(y_ref), rtol=2e-4, atol=2e-4)

    # Production configuration: bf16 weights/activations, f32 accumulation in-kernel.
    # Top-k routing can legitimately differ from the f32 reference under bf16 rounding,
    # so only a finiteness check here.
    params_bf16 = prepare_params(gate_w, wg, wu, wd, swg, swu, swd, dtype=jnp.bfloat16)
    y_bf16 = moe_forward(x.astype(jnp.bfloat16), params_bf16, top_k=K)
    jax.block_until_ready(y_bf16)
    assert bool(jnp.all(jnp.isfinite(y_bf16.astype(jnp.float32))))

    print("KERNEL_OK")
</pallas_src>

<mosaic_0001>
module attributes {stable_mosaic.version = 11 : i64} {
  func.func private @main(%arg0: i32) attributes {dimension_semantics = [#tpu.dimension_semantics<core_parallel>], iteration_bounds = array<i64: 2>, tpu.core_type = #tpu.core_type<sc_scalar_subcore>, window_params = []} {
    return
  }
}

module attributes {stable_mosaic.version = 11 : i64} {
  func.func private @main(%arg0: i32) attributes {dimension_semantics = [#tpu.dimension_semantics<core_parallel>], iteration_bounds = array<i64: 2>, tpu.core_type = #tpu.core_type<sc_scalar_subcore>, window_params = []} {
    return
  }
}

module attributes {stable_mosaic.version = 11 : i64} {
  func.func @_moe_kernel(%arg0: i32, %arg1: i32, %arg2: i32, %arg3: i32, %arg4: memref<10xi32, #tpu.memory_space<smem>>, %arg5: memref<16x32xf32, #tpu.memory_space<vmem>>, %arg6: memref<1x32x128xf32, #tpu.memory_space<vmem>>, %arg7: memref<1x32x128xf32, #tpu.memory_space<vmem>>, %arg8: memref<1x128x32xf32, #tpu.memory_space<vmem>>, %arg9: memref<1x16x1xf32, #tpu.memory_space<vmem>>, %arg10: memref<1x16x32xf32, #tpu.memory_space<vmem>>, %arg11: memref<16x32xf32, #tpu.memory_space<vmem>>) attributes {dimension_semantics = [#tpu.dimension_semantics<parallel>, #tpu.dimension_semantics<parallel>, #tpu.dimension_semantics<arbitrary>, #tpu.dimension_semantics<arbitrary>], iteration_bounds = array<i64: 2, 1, 5, 1>, scalar_prefetch = 1 : i64, scratch_operands = 1 : i64, tpu.core_type = #tpu.core_type<tc>, window_params = [{transform_indices = @transform_0, window_bounds = array<i64: 16, 32>}, {transform_indices = @transform_1, window_bounds = array<i64: 1, 32, 128>}, {transform_indices = @transform_2, window_bounds = array<i64: 1, 32, 128>}, {transform_indices = @transform_3, window_bounds = array<i64: 1, 128, 32>}, {transform_indices = @transform_4, window_bounds = array<i64: 1, 16, 1>}, {transform_indices = @transform_5, window_bounds = array<i64: 1, 16, 32>}]} {
    %c0_i32 = arith.constant 0 : i32
    %0 = arith.cmpi eq, %arg2, %c0_i32 : i32
    %c0_i32_0 = arith.constant 0 : i32
    %1 = arith.cmpi eq, %arg3, %c0_i32_0 : i32
    %2 = arith.andi %0, %1 : i1
    %c4_i32 = arith.constant 4 : i32
    %3 = arith.cmpi eq, %arg2, %c4_i32 : i32
    %c0_i32_1 = arith.constant 0 : i32
    %4 = arith.cmpi eq, %arg3, %c0_i32_1 : i32
    %5 = arith.andi %3, %4 : i1
    %6 = arith.extui %2 : i1 to i32
    %c0_i32_2 = arith.constant 0 : i32
    %7 = arith.cmpi ne, %6, %c0_i32_2 : i32
    scf.if %7 {
      %cst_24 = arith.constant 0.000000e+00 : f32
      %34 = vector.broadcast %cst_24 : f32 to vector<16x32xf32>
      %c0_25 = arith.constant 0 : index
      %c0_26 = arith.constant 0 : index
      %35 = vector.load %arg11[%c0_25, %c0_26] : memref<16x32xf32, #tpu.memory_space<vmem>>, vector<16x32xf32>
      tpu.vector_store %arg11[%c0_25, %c0_26], %34 {strides = array<i32>} : memref<16x32xf32, #tpu.memory_space<vmem>>, vector<16x32xf32>,
    } else {
    }
    %c0 = arith.constant 0 : index
    %c0_3 = arith.constant 0 : index
    %8 = vector.load %arg5[%c0, %c0_3] : memref<16x32xf32, #tpu.memory_space<vmem>>, vector<16x32xf32>
    %c0_4 = arith.constant 0 : index
    %c0_5 = arith.constant 0 : index
    %c0_6 = arith.constant 0 : index
    %9 = vector.load %arg6[%c0_4, %c0_5, %c0_6] : memref<1x32x128xf32, #tpu.memory_space<vmem>>, vector<1x32x128xf32>
    %10 = vector.shape_cast %9 : vector<1x32x128xf32> to vector<32x128xf32>
    %cst = arith.constant dense<0.000000e+00> : vector<16x128xf32>
    %11 = tpu.matmul %8, %10, %cst {dimension_numbers = #tpu.dot_dimension_numbers<[1], [0], [0], [1], [0, 0, 1, 1], [], []>} : vector<16x32xf32>, vector<32x128xf32>, vector<16x128xf32> -> vector<16x128xf32>
    %c0_7 = arith.constant 0 : index
    %c0_8 = arith.constant 0 : index
    %c0_9 = arith.constant 0 : index
    %12 = vector.load %arg7[%c0_7, %c0_8, %c0_9] : memref<1x32x128xf32, #tpu.memory_space<vmem>>, vector<1x32x128xf32>
    %13 = vector.shape_cast %12 : vector<1x32x128xf32> to vector<32x128xf32>
    %cst_10 = arith.constant dense<0.000000e+00> : vector<16x128xf32>
    %14 = tpu.matmul %8, %13, %cst_10 {dimension_numbers = #tpu.dot_dimension_numbers<[1], [0], [0], [1], [0, 0, 1, 1], [], []>} : vector<16x32xf32>, vector<32x128xf32>, vector<16x128xf32> -> vector<16x128xf32>
    %15 = arith.negf %11 : vector<16x128xf32>
    %16 = math.exp %15 : vector<16x128xf32>
    %cst_11 = arith.constant 1.000000e+00 : f32
    %17 = vector.broadcast %cst_11 : f32 to vector<16x128xf32>
    %18 = arith.addf %17, %16 : vector<16x128xf32>
    %19 = arith.divf %17, %18 : vector<16x128xf32>
    %20 = arith.mulf %11, %19 : vector<16x128xf32>
    %21 = arith.mulf %20, %14 : vector<16x128xf32>
    %c0_12 = arith.constant 0 : index
    %c0_13 = arith.constant 0 : index
    %c0_14 = arith.constant 0 : index
    %22 = vector.load %arg9[%c0_12, %c0_13, %c0_14] : memref<1x16x1xf32, #tpu.memory_space<vmem>>, vector<1x16x1xf32>
    %23 = vector.shape_cast %22 : vector<1x16x1xf32> to vector<16x1xf32>
    %24 = vector.broadcast %23 : vector<16x1xf32> to vector<16x128xf32>
    %25 = arith.mulf %21, %24 : vector<16x128xf32>
    %c0_15 = arith.constant 0 : index
    %c0_16 = arith.constant 0 : index
    %26 = vector.load %arg11[%c0_15, %c0_16] : memref<16x32xf32, #tpu.memory_space<vmem>>, vector<16x32xf32>
    %c0_17 = arith.constant 0 : index
    %c0_18 = arith.constant 0 : index
    %c0_19 = arith.constant 0 : index
    %27 = vector.load %arg8[%c0_17, %c0_18, %c0_19] : memref<1x128x32xf32, #tpu.memory_space<vmem>>, vector<1x128x32xf32>
    %28 = vector.shape_cast %27 : vector<1x128x32xf32> to vector<128x32xf32>
    %cst_20 = arith.constant dense<0.000000e+00> : vector<16x32xf32>
    %29 = tpu.matmul %25, %28, %cst_20 {dimension_numbers = #tpu.dot_dimension_numbers<[1], [0], [0], [1], [0, 0, 1, 1], [], []>} : vector<16x128xf32>, vector<128x32xf32>, vector<16x32xf32> -> vector<16x32xf32>
    %30 = arith.addf %26, %29 : vector<16x32xf32>
    %c0_21 = arith.constant 0 : index
    %c0_22 = arith.constant 0 : index
    %31 = vector.load %arg11[%c0_21, %c0_22] : memref<16x32xf32, #tpu.memory_space<vmem>>, vector<16x32xf32>
    tpu.vector_store %arg11[%c0_21, %c0_22], %30 {strides = array<i32>} : memref<16x32xf32, #tpu.memory_space<vmem>>, vector<16x32xf32>,
    %32 = arith.extui %5 : i1 to i32
    %c0_i32_23 = arith.constant 0 : i32
    %33 = arith.cmpi ne, %32, %c0_i32_23 : i32
    scf.if %33 {
      %c0_24 = arith.constant 0 : index
      %c0_25 = arith.constant 0 : index
      %34 = vector.load %arg11[%c0_24, %c0_25] : memref<16x32xf32, #tpu.memory_space<vmem>>, vector<16x32xf32>
      %c0_26 = arith.constant 0 : index
      %c0_27 = arith.constant 0 : index
      %c0_28 = arith.constant 0 : index
      %35 = vector.load %arg10[%c0_26, %c0_27, %c0_28] : memref<1x16x32xf32, #tpu.memory_space<vmem>>, vector<1x16x32xf32>
      %36 = vector.shape_cast %35 : vector<1x16x32xf32> to vector<16x32xf32>
      %37 = vector.shape_cast %34 : vector<16x32xf32> to vector<1x16x32xf32>
      tpu.vector_store %arg10[%c0_26, %c0_27, %c0_28], %37 {strides = array<i32>} : memref<1x16x32xf32, #tpu.memory_space<vmem>>, vector<1x16x32xf32>,
    } else {
    }
    return
  }
  func.func @transform_0(%arg0: i32, %arg1: i32, %arg2: i32, %arg3: i32, %arg4: memref<10xi32, #tpu.memory_space<smem>>) -> (i32, i32) {
    %c0_i32 = arith.constant 0 : i32
    %c0_i32_0 = arith.constant 0 : i32
    return %arg1, %c0_i32 : i32, i32
  }
  func.func @transform_1(%arg0: i32, %arg1: i32, %arg2: i32, %arg3: i32, %arg4: memref<10xi32, #tpu.memory_space<smem>>) -> (i32, i32, i32) {
    %c5_i32 = arith.constant 5 : i32
    %0 = arith.muli %c5_i32, %arg0 : i32
    %1 = arith.addi %0, %arg2 : i32
    %2 = arith.index_cast %1 : i32 to index
    %3 = memref.load %arg4[%2] : memref<10xi32, #tpu.memory_space<smem>>
    %c0_i32 = arith.constant 0 : i32
    %c0_i32_0 = arith.constant 0 : i32
    return %3, %c0_i32, %arg3 : i32, i32, i32
  }
  func.func @transform_2(%arg0: i32, %arg1: i32, %arg2: i32, %arg3: i32, %arg4: memref<10xi32, #tpu.memory_space<smem>>) -> (i32, i32, i32) {
    %c5_i32 = arith.constant 5 : i32
    %0 = arith.muli %c5_i32, %arg0 : i32
    %1 = arith.addi %0, %arg2 : i32
    %2 = arith.index_cast %1 : i32 to index
    %3 = memref.load %arg4[%2] : memref<10xi32, #tpu.memory_space<smem>>
    %c0_i32 = arith.constant 0 : i32
    %c0_i32_0 = arith.constant 0 : i32
    return %3, %c0_i32, %arg3 : i32, i32, i32
  }
  func.func @transform_3(%arg0: i32, %arg1: i32, %arg2: i32, %arg3: i32, %arg4: memref<10xi32, #tpu.memory_space<smem>>) -> (i32, i32, i32) {
    %c5_i32 = arith.constant 5 : i32
    %0 = arith.muli %c5_i32, %arg0 : i32
    %1 = arith.addi %0, %arg2 : i32
    %2 = arith.index_cast %1 : i32 to index
    %3 = memref.load %arg4[%2] : memref<10xi32, #tpu.memory_space<smem>>
    %c0_i32 = arith.constant 0 : i32
    %c0_i32_0 = arith.constant 0 : i32
    return %3, %arg3, %c0_i32 : i32, i32, i32
  }
  func.func @transform_4(%arg0: i32, %arg1: i32, %arg2: i32, %arg3: i32, %arg4: memref<10xi32, #tpu.memory_space<smem>>) -> (i32, i32, i32) {
    %c5_i32 = arith.constant 5 : i32
    %0 = arith.muli %c5_i32, %arg0 : i32
    %1 = arith.addi %0, %arg2 : i32
    %c0_i32 = arith.constant 0 : i32
    %c0_i32_0 = arith.constant 0 : i32
    return %1, %arg1, %c0_i32 : i32, i32, i32
  }
  func.func @transform_5(%arg0: i32, %arg1: i32, %arg2: i32, %arg3: i32, %arg4: memref<10xi32, #tpu.memory_space<smem>>) -> (i32, i32, i32) {
    %c0_i32 = arith.constant 0 : i32
    %c0_i32_0 = arith.constant 0 : i32
    return %arg0, %arg1, %c0_i32 : i32, i32, i32
  }
}

</mosaic_0001>

<bundles_post_ra>
// kernel: moe_forward.1
= control target key start
LH: loop header
LB: loop body
LE: loop exit
PB: predicated region body
PF: predicated region fallthrough
CT: control target
= control target key end

     0   :  { %s1341_s0 = inlined_call_operand.vmem [shape: s32[10], index: 0, kind: input, shape index: {}]   ;;  %s1342_s1 = inlined_call_operand.vmem [shape: f32[16,32], index: 1, kind: input, shape index: {}]   ;;  %s1343_s2 = inlined_call_operand.vmem [shape: f32[9,32,128], index: 2, kind: input, shape index: {}]   ;;  %s1344_s3 = inlined_call_operand.vmem [shape: f32[9,32,128], index: 3, kind: input, shape index: {}]   ;;  %s1345_s4 = inlined_call_operand.vmem [shape: f32[9,128,32], index: 4, kind: input, shape index: {}]   ;;  %s1346_s5 = inlined_call_operand.vmem [shape: f32[10,16,1], index: 5, kind: input, shape index: {}]   ;;  %s1347_s6 = inlined_call_operand.vmem [shape: f32[2,16,32], index: 6, kind: output, shape index: {}]  }
   0x1   :  { %s11_s23 = sshll.u32 %s1341_s0, 4  ;;  %s12_s23 = int_to_ptr.vmem [resolvable:$true] %s11_s23 }
   0x2   :  { %s1131_s24 = scalar_lea.vmem %s12_s23, 16  ;;  %p1136_p1 = scmp.lt.s32.totalorder %s12_s23, %s12_s23 }
   0x3   :  { %p1132_p0 = scmp.ne.s32.totalorder %s12_s23, %s1131_s24  ;;  %p1137_p2 = scmp.lt.s32.totalorder %s1131_s24, %s1131_s24 }
   0x5   :  { %p1138_p3 = por %p1137_p2, %p1136_p1 }
   0x7   :  { %p1139_p4 = pnand %p1138_p3, %p1132_p0 }
   0x9   :  { %1142 = shalt.err (!%p1139_p4)  }
   0xa   :  { %s1185_s25 = smov [#allocation4]  }
   0xb   :  { %14 = dma.vmem_to_smem %s12_s23, 16, %s1185_s25, [#allocation3] }
   0xc   :  { %1163 = dma.done.wait [#allocation3], 16 }
   0xd   :  { %1164 = vsyncadd [#allocation3], 4294967280 }
   0xe   :  { %16 = sfence }
   0xf   :  { %s1226_s26 = smov 0   ;;  %s1228_s27 = smov 0  }
  0x10   :  { %s1230_s28 = smov 0   ;;  %s1232_s0 = smov 0  }
  0x11   :  { %s1234_s29 = smov 0  }
  0x12 LB: > { %s40_s30 = sadd.s32 1, %s1175_s28  ;;  %s48_s7 = sadd.s32 1, %s1179_s0  ;;  %s1183_s29 = sphi %s1234_s29, %s22_s29   ;;  %s1179_s0 = sphi %s1232_s0, %s1351_s0   ;;  %s1175_s28 = sphi %s1230_s28, %s1350_s28   ;;  %s1171_s27 = sphi %s1228_s27, %s1349_s27   ;;  %s1167_s26 = sphi %s1226_s26, %s1348_s26  }
  0x13   : > { %p42_p5 = scmp.ge.s32.totalorder %s40_s30, 5  ;;  %p964_p6 = scmp.ge.s32.totalorder %s1183_s29, 1 }
  0x14   : > { %p331_p7 = scmp.lt.s32.totalorder %s1183_s29, 11 }
  0x15   : > { %s1353_s30 = smov (%p42_p5, %s40_s30), 0  ;;  %s1355_s7 = smov (!%p42_p5, %s48_s7), %s1179_s0 }
  0x16   : > { %p332_p8 = pnand %p964_p6, %p331_p7  ;;  %p50_p9 = scmp.ge.s32.totalorder %s1355_s7, 2 }
  0x17   : > { %s414_s8 = smul.u32 (!%p332_p8), 5, %s1171_s27  ;;  %p482_p10 = scmp.eq.s32.totalorder (!%p332_p8), %s1167_s26, 0 }
  0x18   : > { %s1357_s7 = smov (%p50_p9, %s1355_s7), 0  ;;  %335 = sbr.rel (%p332_p8) target bundleno = 492 (0x1ec), region = 40 }
  0x19   : > { %p486_p11 = scmp.eq.s32.totalorder (!%p332_p8), %s1167_s26, 4  ;;  %s415_s9 = sadd.s32 (!%p332_p8), %s1167_s26, %s414_s8 }
  0x1a   : > { %p473_p12 = scmp.lt.s32.totalorder (!%p332_p8), %s1171_s27, 1  ;;  %s416_s10 = sld [smem:[#allocation4 + %s415_s9]] (!%p332_p8) }
  0x1b   : > { %p461_p13 = scmp.lt.s32.totalorder (!%p332_p8), %s415_s9, 9  ;;  %s430_s11 = sld [smem:[#allocation4 + %s415_s9]] (!%p332_p8) }
  0x1c   : > { %s444_s12 = sld [smem:[#allocation4 + %s415_s9]] (!%p332_p8) }
  0x1d   : > { %s1359_s9 = smov (!%p461_p13, %s415_s9), 9  ;;  %s1361_s27 = smov (!%p473_p12, %s1171_s27), 1  ;;  %vm491_vm0 = vcmask (%p482_p10), 261120   ;;  %v1186_v0 = vmov (%p482_p10), 0.0  }
  0x1e   : > { %s988_s13 = sshll.u32 %s1359_s9, 4  ;;  %s989_s17 = sshll.u32 %s1361_s27, 4  ;;  %492 = vst.msk [vmem:[#allocation2] sm:$0xff] (%p482_p10), %vm491_vm0, %v1186_v0  ;;  %493 = vst.msk [vmem:[#allocation2 + $0x8] sm:$0xff] (%p482_p10), %vm491_vm0, %v1186_v0 }
  0x1f   : > { %s1264_s16 = scalar_lea.vmem %s1346_s5, %s988_s13  ;;  %s1277_s13 = scalar_lea.vmem %s1347_s6, %s989_s17 }
  0x20   : > { %p417_p0 = scmp.lt.s32.totalorder %s416_s10, 8 }
  0x21   : > { %p431_p1 = scmp.lt.s32.totalorder %s430_s11, 8 }
  0x22   : > { %s1363_s10 = smov (!%p417_p0, %s416_s10), 8  ;;  %p446_p2 = scmp.lt.s32.totalorder %s444_s12, 8 }
  0x23   : > { %s1365_s11 = smov (!%p431_p1, %s430_s11), 8  ;;  %s985_s18 = sshll.u32 %s1363_s10, 5 }
  0x24   : > { %s424_s21 = scalar_lea.vmem %s1343_s2, %s985_s18  ;;  %s986_s22 = sshll.u32 %s1365_s11, 5 }
  0x25   : > { %s1272_s25 = scalar_lea.vmem %s1344_s3, %s986_s22  ;;  %s1367_s12 = smov (!%p446_p2, %s444_s12), 8 }
  0x26   : > { %s987_s27 = sshll.u32 %s1367_s12, 7  ;;  %490 = sbr.rel (!%p482_p10) target bundleno = 43 (0x2b), region = 44 }
  0x27   : > { %s1282_s15 = scalar_lea.vmem %s1345_s4, %s987_s27 }
  0x2b PF: > { %v499_v1 = vld [vmem:[%s424_s21 + $0x18] sm:$0xff]  ;;  %v498_v2 = vld [vmem:[%s424_s21 + $0x10] sm:$0xff]  ;;  %vm500_vm1 = vcmask 261120   ;;  %v494_v3 = vld [vmem:[%s1342_s1] sm:$0xff]  ;;  %v1187_v4 = vmov 0  }
  0x2c   : > { %1022 = vmatprep.subr.mxu1 %v499_v1  ;;  %1122 = vset.pattern.permute.xlu0 %v1187_v4  ;;  %v497_v5 = vld [vmem:[%s424_s21 + $0x8] sm:$0xff]  ;;  %v677_v6 = vld [vmem:[%s1264_s16] sm:$0xff]  ;;  %v585_v10 = vld [vmem:[%s1272_s25 + $0x18] sm:$0xff] }
  0x2d   : > { %1023 = vmatpush3.msra.mxu1 %v499_v1  ;;  %1030 = vmatprep.mubr.msk.f32.mxu1 %vm500_vm1, %v494_v3  ;;  %v496_v7 = vld [vmem:[%s424_s21] sm:$0xff]  ;;  %v678_v8 = vld [vmem:[%s1264_s16 + $0x8] sm:$0xff]  ;;  %v584_v11 = vld [vmem:[%s1272_s25 + $0x10] sm:$0xff] }
  0x2e   : > { %1024 = vmatprep.subr.mxu1 %v498_v2  ;;  %681 = vperm.xlu0 %1122, %v677_v6   ;;  %v495_v9 = vld [vmem:[%s1342_s1 + $0x8] sm:$0xff]  ;;  %v582_v13 = vld [vmem:[%s1272_s25] sm:$0xff]  ;;  %v708_v14 = vld [vmem:[%s1282_s15 + $0x78] sm:$0xff] }
  0x2f   : > { %1025 = vmatpush3.msra.mxu1 %v498_v2  ;;  %v583_v12 = vld [vmem:[%s1272_s25 + $0x8] sm:$0xff]  ;;  %1044 = vmatprep.subr.mxu0 %v708_v14  ;;  %v707_v15 = vld [vmem:[%s1282_s15 + $0x70] sm:$0xff]  ;;  %v705_v17 = vld [vmem:[%s1282_s15 + $0x60] sm:$0xff] }
  0x30   : > { %1026 = vmatprep.subr.mxu1 %v497_v5  ;;  %1045 = vmatpush3.msra.mxu0 %v708_v14  ;;  %v706_v16 = vld [vmem:[%s1282_s15 + $0x68] sm:$0xff]  ;;  %v704_v18 = vld [vmem:[%s1282_s15 + $0x58] sm:$0xff]  ;;  %v703_v19 = vld [vmem:[%s1282_s15 + $0x50] sm:$0xff] }
  0x31   : > { %1027 = vmatpush3.msra.mxu1 %v497_v5  ;;  %1046 = vmatprep.subr.mxu0 %v707_v15  ;;  %v702_v20 = vld [vmem:[%s1282_s15 + $0x48] sm:$0xff]  ;;  %v701_v21 = vld [vmem:[%s1282_s15 + $0x40] sm:$0xff]  ;;  %v700_v22 = vld [vmem:[%s1282_s15 + $0x38] sm:$0xff] }
  0x32   : > { %1028 = vmatprep.subr.mxu1 %v496_v7  ;;  %686 = vperm.xlu0 %1122, %v678_v8   ;;  %v699_v23 = vld [vmem:[%s1282_s15 + $0x30] sm:$0xff]  ;;  %v698_v24 = vld [vmem:[%s1282_s15 + $0x28] sm:$0xff]  ;;  %v697_v25 = vld [vmem:[%s1282_s15 + $0x20] sm:$0xff] }
  0x33   : > { %1029 = vmatpush3.msra.mxu1 %v496_v7  ;;  %1047 = vmatpush3.msra.mxu0 %v707_v15  ;;  %v696_v26 = vld [vmem:[%s1282_s15 + $0x18] sm:$0xff]  ;;  %v695_v27 = vld [vmem:[%s1282_s15 + $0x10] sm:$0xff]  ;;  %v694_v28 = vld [vmem:[%s1282_s15 + $0x8] sm:$0xff] }
  0x34   : > { %1031 = vmatmul.mubr.msk.f32.vlgmr.msra.gmra.mxu1 %vm500_vm1, %v495_v9  ;;  %1033 = vmatprep.subr.mxu1 %v585_v10  ;;  %v693_v29 = vld [vmem:[%s1282_s15] sm:$0xff]  ;;  %v692_v50 = vld [vmem:[#allocation2 + $0x8] sm:$0xff]  ;;  %v691_v52 = vld [vmem:[#allocation2] sm:$0xff] }
  0x35   : > { %1034 = vmatpush3.msra.mxu1 %v585_v10  ;;  %1041 = vmatprep.mubr.msk.f32.mxu1 %vm500_vm1, %v494_v3 }
  0x36   : > { %1035 = vmatprep.subr.mxu1 %v584_v11  ;;  %1048 = vmatprep.subr.mxu0 %v706_v16 }
  0x37   : > { %1036 = vmatpush3.msra.mxu1 %v584_v11  ;;  %1049 = vmatpush3.msra.mxu0 %v706_v16 }
  0x38   : > { %1037 = vmatprep.subr.mxu1 %v583_v12  ;;  %1050 = vmatprep.subr.mxu0 %v705_v17 }
  0x39   : > { %1038 = vmatpush3.msra.mxu1 %v583_v12  ;;  %1051 = vmatpush3.msra.mxu0 %v705_v17 }
  0x3a   : > { %1039 = vmatprep.subr.mxu1 %v582_v13  ;;  %1052 = vmatprep.subr.mxu0 %v704_v18 }
  0x3b   : > { %1040 = vmatpush3.msra.mxu1 %v582_v13  ;;  %1053 = vmatpush3.msra.mxu0 %v704_v18 }
  0x3c   : > { %1042 = vmatmul.mubr.msk.f32.vlgmr.msra.gmra.mxu1 %vm500_vm1, %v495_v9  ;;  %1054 = vmatprep.subr.mxu0 %v703_v19 }
  0x3d   : > { %1055 = vmatpush3.msra.mxu0 %v703_v19 }
  0x3e   : > { %1056 = vmatprep.subr.mxu0 %v702_v20 }
  0x3f   : > { %1057 = vmatpush3.msra.mxu0 %v702_v20 }
  0x40   : > { %1058 = vmatprep.subr.mxu0 %v701_v21 }
  0x41   : > { %1059 = vmatpush3.msra.mxu0 %v701_v21 }
  0x42   : > { %1060 = vmatprep.subr.mxu0 %v700_v22 }
  0x43   : > { %1061 = vmatpush3.msra.mxu0 %v700_v22 }
  0x44   : > { %1062 = vmatprep.subr.mxu0 %v699_v23 }
  0x45   : > { %1063 = vmatpush3.msra.mxu0 %v699_v23 }
  0x46   : > { %1064 = vmatprep.subr.mxu0 %v698_v24 }
  0x47   : > { %1065 = vmatpush3.msra.mxu0 %v698_v24 }
  0x48   : > { %1066 = vmatprep.subr.mxu0 %v697_v25 }
  0x49   : > { %1067 = vmatpush3.msra.mxu0 %v697_v25 }
  0x4a   : > { %1068 = vmatprep.subr.mxu0 %v696_v26 }
  0x4b   : > { %1069 = vmatpush3.msra.mxu0 %v696_v26 }
  0x4c   : > { %1070 = vmatprep.subr.mxu0 %v695_v27 }
  0x4d   : > { %1071 = vmatpush3.msra.mxu0 %v695_v27 }
  0x4e   : > { %1072 = vmatprep.subr.mxu0 %v694_v28 }
  0x4f   : > { %1073 = vmatpush3.msra.mxu0 %v694_v28 }
  0x50   : > { %1074 = vmatprep.subr.mxu0 %v693_v29 }
  0x51   : > { %1075 = vmatpush3.msra.mxu0 %v693_v29 }
  0xa9   : > { %v682_v38 = vpop.permute.xlu0 %681 }
  0xad   : > { %v687_v47 = vpop.permute.xlu0 %686 }
  0xf4   : > { %v1032_v30 = vpop.f32.mrf.mxu1 }
  0xf5   : > { %v982_v31 = vmul.f32 -1.442695, %v1032_v30 }
  0xf6   : > { %v573_v32 = vpop.f32.mrf.mxu1 }
  0xf7   : > { %1123 = vpow2.f32 %v982_v31  ;;  %v981_v33 = vmul.f32 -1.442695, %v573_v32 }
  0xf9   : > { %1125 = vpow2.f32 %v981_v33 }
  0xfc   : > { %v1043_v40 = vpop.f32.mrf.mxu1 }
  0xfe   : > { %v652_v45 = vpop.f32.mrf.mxu1 }
 0x104   : > { %v1124_v34 = vpop.eup %1123 }
 0x105   : > { %v668_v35 = vadd.f32 1.0, %v1124_v34 }
 0x106   : > { %v1126_v36 = vpop.eup %1125 }
 0x107   : > { %1127 = vrcp.f32 %v668_v35  ;;  %v667_v37 = vadd.f32 1.0, %v1126_v36 }
 0x109   : > { %1129 = vrcp.f32 %v667_v37 }
 0x114   : > { %v1128_v39 = vpop.eup %1127 }
 0x115   : > { %v674_v41 = vmul.f32 %v1128_v39, %v1032_v30 }
 0x116   : > { %v1130_v42 = vpop.eup %1129 }
 0x117   : > { %v673_v43 = vmul.f32 %v1130_v42, %v573_v32  ;;  %v676_v44 = vmul.f32 %v1043_v40, %v674_v41 }
 0x119   : > { %v675_v46 = vmul.f32 %v673_v43, %v652_v45  ;;  %v690_v49 = vmul.f32 %v687_v47, %v676_v44 }
 0x11b   : > { %v689_v48 = vmul.f32 %v682_v38, %v675_v46 }
 0x11d   : > { %1076 = vmatprep.mubr.f32.mxu0 %v689_v48 }
 0x11e   : > { %1077 = vmatmul.mubr.f32.vlgmr.msra.gmra.mxu0 %v690_v49 }
 0x1de   : > { %v1078_v51 = vpop.f32.mrf.mxu0 }
 0x1df   : > { %v785_v53 = vadd.f32 %v1078_v51, %v692_v50  ;;  %789 = sbr.rel (!%p486_p11) target bundleno = 492 (0x1ec), region = 48 }
 0x1e0   : > { %v775_v54 = vpop.f32.mrf.mxu0 }
 0x1e1   : > { %787 = vst.msk [vmem:[#allocation2 + $0x8] sm:$0xff] %vm500_vm1, %v785_v53  ;;  %v784_v55 = vadd.f32 %v775_v54, %v691_v52 }
 0x1e3   : > { %786 = vst.msk [vmem:[#allocation2] sm:$0xff] %vm500_vm1, %v784_v55 }
 0x1e8   : > { %v791_v57 = vld [vmem:[#allocation2 + $0x8] sm:$0xff] }
 0x1e9   : > { %793 = vst.msk [vmem:[%s1277_s13 + $0x8] sm:$0xff] %vm500_vm1, %v791_v57 }
 0x1ea   : > { %v790_v56 = vld [vmem:[#allocation2] sm:$0xff] }
 0x1eb   : > { %792 = vst.msk [vmem:[%s1277_s13] sm:$0xff] %vm500_vm1, %v790_v56 }
 0x1ec PF: > { %s22_s29 = sadd.s32 1, %s1183_s29   ;;  %s1348_s26 = smov %s1175_s28 }
 0x1ed   : > { %p19_p3 = scmp.ge.s32.totalorder %s22_s29, 12   ;;  %s1349_s27 = smov %s1179_s0 }
 0x1ee   : > { %s1350_s28 = smov %s1353_s30  ;;  %s1351_s0 = smov %s1357_s7 }
 0x1ef   :  { %21 = sbr.rel (!%p19_p3) target bundleno = 18 (0x12), region = 90 }

</bundles_post_ra>
